<compile_context>
chip_gen: v6e
topology: v6e:2x2x1
jax: 0.10.0
libtpu: 0.0.40
codegen_flags: <defaults>
</compile_context>

<pallas_src>
import functools

import jax
import jax.numpy as jnp
from jax.experimental import pallas as pl
from jax.experimental.pallas import tpu as pltpu

_LANE = 128


def _round_up(x, m):
    return ((x + m - 1) // m) * m


def _vmem_capacity_bytes():
    try:
        return int(pltpu.get_tpu_info().vmem_capacity_bytes)
    except Exception:  # pragma: no cover - conservative fallback (v7x per-core VMEM)
        return 64 << 20


def _vmem_cap_limit():
    # Leave headroom for compiler scratch / surrounding fusions:
    # ~40 MiB on v7x (64 MiB physical), ~80 MiB on v5e/v6e (128 MiB physical).
    return (_vmem_capacity_bytes() * 5) // 8


# ----------------------------------------------------------------------------
# Fused encoder kernel (adjacency resident in VMEM, all layers in one call).
#   ego^T : (D, N) f32    A^T : (N, N) bf16/f32    out : (D, N) f32 (layer mean)
# ----------------------------------------------------------------------------
def _fused_encoder_kernel(num_layers, ego_ref, adj_ref, out_ref):
    adj = adj_ref[...]                      # (N, N), loaded from HBM exactly once
    cur = ego_ref[...]                      # (D, N) f32
    acc = cur
    for _ in range(num_layers):             # static, small layer count -> unrolled
        cur = jnp.dot(cur.astype(adj.dtype), adj,
                      preferred_element_type=jnp.float32)
        acc = acc + cur
    out_ref[...] = acc * (1.0 / float(num_layers + 1))


def _fused_vmem_need(D, N, adj_dtype, num_layers):
    adj_bytes = N * N * jnp.dtype(adj_dtype).itemsize
    act_bytes = D * N * 4
    # adjacency possibly double-buffered + a handful of live (D, N) f32 activations
    # inside the unrolled layer loop, plus headroom.
    return 2 * adj_bytes + (2 * num_layers + 6) * act_bytes + (4 << 20)


def _fused_encoder(ego_t, adj_t, num_layers, adj_dtype):
    D, N = ego_t.shape
    adj_c = adj_t.astype(adj_dtype)
    need = _fused_vmem_need(D, N, adj_dtype, num_layers)
    vmem_bytes = int(min(max(need, 32 << 20), _vmem_cap_limit()))

    cost = pl.CostEstimate(
        flops=2 * num_layers * N * N * D,
        transcendentals=0,
        bytes_accessed=N * N * jnp.dtype(adj_dtype).itemsize + 2 * D * N * 4,
    )

    return pl.pallas_call(
        functools.partial(_fused_encoder_kernel, num_layers),
        out_shape=jax.ShapeDtypeStruct((D, N), jnp.float32),
        in_specs=[
            pl.BlockSpec((D, N), lambda: (0, 0)),
            pl.BlockSpec((N, N), lambda: (0, 0)),
        ],
        out_specs=pl.BlockSpec((D, N), lambda: (0, 0)),
        compiler_params=pltpu.CompilerParams(vmem_limit_bytes=vmem_bytes),
        cost_estimate=cost,
    )(ego_t, adj_c)


# ----------------------------------------------------------------------------
# Tiled propagation kernel (one layer),  new_ego^T = ego^T @ A^T, A streamed from HBM.
#   ego^T : (D, Npad) bf16    A^T : (Npad, Npad) bf16
#   outputs: f32 layer result (for the layer sum) + bf16 copy (next layer's input)
# Grid = (Npad//tn  [output-column tiles, parallel], Npad//tk  [reduction, arbitrary]).
# ----------------------------------------------------------------------------
def _propagate_kernel(ego_ref, adj_ref, out_ref, nxt_ref, acc_ref):
    k = pl.program_id(1)

    @pl.when(k == 0)
    def _():
        acc_ref[...] = jnp.zeros_like(acc_ref)

    acc_ref[...] += jnp.dot(ego_ref[...], adj_ref[...],
                            preferred_element_type=jnp.float32)

    @pl.when(k == pl.num_programs(1) - 1)
    def _():
        res = acc_ref[...]
        out_ref[...] = res                           # f32 layer output (layer mean)
        nxt_ref[...] = res.astype(nxt_ref.dtype)     # bf16 input for the next layer


def _pow2_tile(limit, preferred):
    t = _LANE
    while t * 2 <= min(limit, preferred):
        t *= 2
    return t


def _select_tiles(N, tn, tk):
    np128 = _round_up(N, _LANE)
    # Keep >= 2 output-column tiles where possible so ('parallel', ...) can shard the
    # j axis across both TensorCores on v7x (single-TC v5e/v6e are unaffected).
    tn_limit = max(_LANE, (np128 // (2 * _LANE)) * _LANE)
    tn_sel = _pow2_tile(tn_limit, tn)
    tk_sel = _pow2_tile(np128, tk)
    # Both tiles are power-of-two multiples of 128, so the smaller divides the larger.
    npad = _round_up(N, max(tn_sel, tk_sel))
    return tn_sel, tk_sel, npad


def lightgcn_propagate(ego_bf16, adj_bf16, *, tn, tk):
    D, npad = ego_bf16.shape
    assert adj_bf16.shape == (npad, npad)
    assert npad % tn == 0 and npad % tk == 0
    assert D % 8 == 0, "emb_size must be a multiple of 8 for f32 sublane tiling"
    grid = (npad // tn, npad // tk)

    adj_bpe = 2  # bf16
    vmem_need = (2 * (tk * tn * adj_bpe)      # adjacency tiles, double-buffered
                 + 2 * (D * tk * 2)           # ego^T reduction tiles
                 + 2 * (D * tn * (4 + 2))     # f32 + bf16 output tiles
                 + D * tn * 4                 # f32 accumulator scratch
                 + (8 << 20))                 # headroom
    vmem_bytes = int(min(max(vmem_need, 32 << 20), _vmem_cap_limit()))

    cost = pl.CostEstimate(
        flops=2 * npad * npad * D,
        transcendentals=0,
        bytes_accessed=(npad * npad * adj_bpe          # adjacency stream
                        + D * npad * 2 * grid[0]       # ego^T re-read per column tile
                        + D * npad * (4 + 2)),          # f32 + bf16 outputs
    )

    return pl.pallas_call(
        _propagate_kernel,
        out_shape=(jax.ShapeDtypeStruct((D, npad), jnp.float32),
                   jax.ShapeDtypeStruct((D, npad), jnp.bfloat16)),
        grid_spec=pltpu.PrefetchScalarGridSpec(
            num_scalar_prefetch=0,
            grid=grid,
            in_specs=[
                pl.BlockSpec((D, tk), lambda j, k: (0, k)),    # ego^T reduction tile
                pl.BlockSpec((tk, tn), lambda j, k: (k, j)),   # adjacency tile
            ],
            out_specs=[
                pl.BlockSpec((D, tn), lambda j, k: (0, j)),
                pl.BlockSpec((D, tn), lambda j, k: (0, j)),
            ],
            scratch_shapes=[pltpu.VMEM((D, tn), jnp.float32)],
        ),
        compiler_params=pltpu.CompilerParams(
            dimension_semantics=("parallel", "arbitrary"),
            vmem_limit_bytes=vmem_bytes,
        ),
        cost_estimate=cost,
    )(ego_bf16, adj_bf16)


# ----------------------------------------------------------------------------
# Encoder: final^T = mean_k(ego_k^T),  ego_{k+1} = A @ ego_k.
# ----------------------------------------------------------------------------
def lightgcn_encoder(norm_adj, ego_t, num_layers, *,
                     adj_is_symmetric=True, adj_dtype=jnp.bfloat16,
                     tn=2048, tk=512, force_tiled=False):
    """Transposed-layout LightGCN encoder.

    The kernels compute ego_{k+1}^T = ego_k^T @ A^T.  LightGCN's symmetric
    normalization gives A^T == A, so with adj_is_symmetric=True (default) A is used
    directly; pass adj_is_symmetric=False for non-symmetric normalizations
    (e.g. random-walk D^-1 A) and the transpose is taken explicitly.
    adj_dtype=jnp.float32 keeps full precision in the VMEM-resident path if needed.
    """
    D, N = ego_t.shape
    adj_t = norm_adj if adj_is_symmetric else norm_adj.T

    if not force_tiled and _fused_vmem_need(D, N, adj_dtype, num_layers) <= _vmem_cap_limit():
        # Whole encoder in one kernel; A read from HBM exactly once.
        return _fused_encoder(ego_t, adj_t, num_layers, adj_dtype)

    # Tiled fallback: per-layer pallas_call streaming A from HBM with large tiles.
    tn_sel, tk_sel, npad = _select_tiles(N, tn, tk)
    adj_p = jnp.pad(adj_t, ((0, npad - N), (0, npad - N))).astype(jnp.bfloat16)
    ego_p = jnp.pad(ego_t, ((0, 0), (0, npad - N)))
    acc = ego_p                              # f32 running layer sum
    cur_bf = ego_p.astype(jnp.bfloat16)
    for _ in range(num_layers):              # static layer count
        cur_f32, cur_bf = lightgcn_propagate(cur_bf, adj_p, tn=tn_sel, tk=tk_sel)
        acc = acc + cur_f32                  # tiny (D, Npad) f32 adds, left to XLA
    final = acc * (1.0 / float(num_layers + 1))
    return final[:, :N]


# ----------------------------------------------------------------------------
# Full forward (gather + BPR scoring stay in XLA per the perf review: at (D, B)=(32, 8)
# a Pallas call is pure launch overhead and a masked 8-lane store).
# ----------------------------------------------------------------------------
def lightgcn_forward(user_emb, item_emb, norm_adj, num_layers, data, is_train, *,
                     force_tiled=False, tn=2048, tk=512):
    n_user = user_emb.shape[0]
    ego_t = jnp.concatenate([user_emb, item_emb], axis=0).T        # (D, N), lane-dense
    final_t = lightgcn_encoder(norm_adj, ego_t, num_layers,
                               force_tiled=force_tiled, tn=tn, tk=tk)
    ue_t = final_t[:, :n_user]
    ie_t = final_t[:, n_user:]
    u = jnp.take(ue_t, data[0], axis=1)                            # (D, B)
    i_pos = jnp.take(ie_t, data[1], axis=1)
    pos = jnp.sum(u * i_pos, axis=0)                               # (B,)
    if is_train:
        i_neg = jnp.take(ie_t, data[2], axis=1)
        neg = jnp.sum(u * i_neg, axis=0)
        return jnp.mean(jax.nn.softplus(neg - pos))
    return pos


# ----------------------------------------------------------------------------
# Deterministic parameter / graph construction
# ----------------------------------------------------------------------------
def xavier_uniform(key, shape):
    fan_out, fan_in = shape
    bound = (6.0 / (fan_in + fan_out)) ** 0.5
    return jax.random.uniform(key, shape, jnp.float32, -bound, bound)


def build_norm_adj(key, n_user, n_item):
    # Random bipartite interaction matrix R; symmetric normalization D^-1/2 A D^-1/2.
    R = (jax.random.uniform(key, (n_user, n_item)) < 0.1).astype(jnp.float32)
    N = n_user + n_item
    A = jnp.zeros((N, N), jnp.float32)
    A = A.at[:n_user, n_user:].set(R)
    A = A.at[n_user:, :n_user].set(R.T)
    deg = jnp.sum(A, axis=1)
    d_inv_sqrt = jnp.where(deg > 0, 1.0 / jnp.sqrt(jnp.maximum(deg, 1e-12)), 0.0)
    return d_inv_sqrt[:, None] * A * d_inv_sqrt[None, :]


if __name__ == "__main__":
    n_user, n_item, emb_size = 96, 160, 32     # N = 256 total nodes
    num_layers = 3
    batch = 8

    key = jax.random.PRNGKey(0)
    (k_u, k_i, k_g, k_b0, k_b1, k_b2, k_u2, k_i2, k_g2) = jax.random.split(key, 9)

    user_emb = xavier_uniform(k_u, (n_user, emb_size))
    item_emb = xavier_uniform(k_i, (n_item, emb_size))
    norm_adj = build_norm_adj(k_g, n_user, n_item)

    users = jax.random.randint(k_b0, (batch,), 0, n_user)
    pos_items = jax.random.randint(k_b1, (batch,), 0, n_item)
    neg_items = jax.random.randint(k_b2, (batch,), 0, n_item)
    data = (users, pos_items, neg_items)

    fwd = jax.jit(lightgcn_forward, static_argnums=(3, 5))
    # Forced tiled path; 128x128 tiles only to get a >1-step reduction grid at this tiny
    # demo N (production defaults are tn=2048, tk=512 per the HBM-roofline analysis).
    fwd_tiled = jax.jit(
        functools.partial(lightgcn_forward, force_tiled=True, tn=128, tk=128),
        static_argnums=(3, 5))

    # Fused (VMEM-resident adjacency) encoder path: train loss + eval scores.
    loss = fwd(user_emb, item_emb, norm_adj, num_layers, data, True)
    scores = fwd(user_emb, item_emb, norm_adj, num_layers, data, False)
    # Tiled (HBM-streamed adjacency) path, forced, grid = (2 parallel, 2 reduction).
    loss_tiled = fwd_tiled(user_emb, item_emb, norm_adj, num_layers, data, True)
    jax.block_until_ready((loss, scores, loss_tiled))

    # Pure f32 JAX reference (kernels use bf16 MXU inputs -> loosened tolerance).
    ego = jnp.concatenate([user_emb, item_emb], axis=0)
    allsum, cur = ego, ego
    for _ in range(num_layers):
        cur = norm_adj @ cur
        allsum = allsum + cur
    final = allsum / (num_layers + 1)
    ue_r, ie_r = final[:n_user], final[n_user:]
    pos_r = jnp.sum(ue_r[users] * ie_r[pos_items], axis=-1)
    neg_r = jnp.sum(ue_r[users] * ie_r[neg_items], axis=-1)
    loss_r = jnp.mean(jax.nn.softplus(neg_r - pos_r))

    assert jnp.allclose(loss, loss_r, atol=2e-2, rtol=2e-2), (loss, loss_r)
    assert jnp.allclose(loss_tiled, loss_r, atol=2e-2, rtol=2e-2), (loss_tiled, loss_r)
    assert jnp.allclose(scores, pos_r, atol=2e-2, rtol=2e-2), (scores, pos_r)

    # Second mini-config: node count NOT a multiple of 128 -> exercises the zero-padding
    # path of the tiled encoder.
    n_user2, n_item2 = 40, 56                  # N = 96 -> padded to 128
    user_emb2 = xavier_uniform(k_u2, (n_user2, emb_size))
    item_emb2 = xavier_uniform(k_i2, (n_item2, emb_size))
    norm_adj2 = build_norm_adj(k_g2, n_user2, n_item2)
    ego2_t = jnp.concatenate([user_emb2, item_emb2], axis=0).T

    enc_tiled = jax.jit(
        functools.partial(lightgcn_encoder, force_tiled=True, tn=128, tk=128),
        static_argnums=(2,))
    final2_t = enc_tiled(norm_adj2, ego2_t, num_layers)
    jax.block_until_ready(final2_t)

    ego2 = jnp.concatenate([user_emb2, item_emb2], axis=0)
    allsum2, cur2 = ego2, ego2
    for _ in range(num_layers):
        cur2 = norm_adj2 @ cur2
        allsum2 = allsum2 + cur2
    final2_r = (allsum2 / (num_layers + 1)).T
    assert jnp.allclose(final2_t, final2_r, atol=2e-2, rtol=2e-2), "tiled encoder mismatch"

    print("KERNEL_OK")
</pallas_src>

<mosaic_0001>
module attributes {stable_mosaic.version = 11 : i64} {
  func.func @_fused_encoder_kernel(%arg0: memref<32x256xf32, #tpu.memory_space<vmem>>, %arg1: memref<256x256xbf16, #tpu.memory_space<vmem>>, %arg2: memref<32x256xf32, #tpu.memory_space<vmem>>) attributes {dimension_semantics = [], scalar_prefetch = 0 : i64, scratch_operands = 0 : i64, tpu.core_type = #tpu.core_type<tc>} {
    %c0 = arith.constant 0 : index
    %c0_0 = arith.constant 0 : index
    %0 = vector.load %arg1[%c0, %c0_0] : memref<256x256xbf16, #tpu.memory_space<vmem>>, vector<256x256xbf16>
    %c0_1 = arith.constant 0 : index
    %c0_2 = arith.constant 0 : index
    %1 = vector.load %arg0[%c0_1, %c0_2] : memref<32x256xf32, #tpu.memory_space<vmem>>, vector<32x256xf32>
    %2 = arith.truncf %1 : vector<32x256xf32> to vector<32x256xbf16>
    %cst = arith.constant dense<0.000000e+00> : vector<32x256xf32>
    %3 = tpu.matmul %2, %0, %cst {dimension_numbers = #tpu.dot_dimension_numbers<[1], [0], [0], [1], [0, 0, 1, 1], [], []>} : vector<32x256xbf16>, vector<256x256xbf16>, vector<32x256xf32> -> vector<32x256xf32>
    %4 = arith.addf %1, %3 : vector<32x256xf32>
    %5 = arith.truncf %3 : vector<32x256xf32> to vector<32x256xbf16>
    %cst_3 = arith.constant dense<0.000000e+00> : vector<32x256xf32>
    %6 = tpu.matmul %5, %0, %cst_3 {dimension_numbers = #tpu.dot_dimension_numbers<[1], [0], [0], [1], [0, 0, 1, 1], [], []>} : vector<32x256xbf16>, vector<256x256xbf16>, vector<32x256xf32> -> vector<32x256xf32>
    %7 = arith.addf %4, %6 : vector<32x256xf32>
    %8 = arith.truncf %6 : vector<32x256xf32> to vector<32x256xbf16>
    %cst_4 = arith.constant dense<0.000000e+00> : vector<32x256xf32>
    %9 = tpu.matmul %8, %0, %cst_4 {dimension_numbers = #tpu.dot_dimension_numbers<[1], [0], [0], [1], [0, 0, 1, 1], [], []>} : vector<32x256xbf16>, vector<256x256xbf16>, vector<32x256xf32> -> vector<32x256xf32>
    %10 = arith.addf %7, %9 : vector<32x256xf32>
    %cst_5 = arith.constant 2.500000e-01 : f32
    %11 = vector.broadcast %cst_5 : f32 to vector<32x256xf32>
    %12 = arith.mulf %10, %11 : vector<32x256xf32>
    %c0_6 = arith.constant 0 : index
    %c0_7 = arith.constant 0 : index
    %13 = vector.load %arg2[%c0_6, %c0_7] : memref<32x256xf32, #tpu.memory_space<vmem>>, vector<32x256xf32>
    tpu.vector_store %arg2[%c0_6, %c0_7], %12 {strides = array<i32>} : memref<32x256xf32, #tpu.memory_space<vmem>>, vector<32x256xf32>,
    return
  }
}

</mosaic_0001>

<bundles_post_ra>
// kernel: lightgcn_forward.1
= control target key start
LH: loop header
LB: loop body
LE: loop exit
PB: predicated region body
PF: predicated region fallthrough
CT: control target
= control target key end

     0   :  { %s925_s1 = inlined_call_operand.vmem [shape: bf16[256,256], index: 1, kind: input, shape index: {}]   ;;  %s926_s0 = inlined_call_operand.vmem [shape: f32[32,256], index: 0, kind: input, shape index: {}]   ;;  %s927_s2 = inlined_call_operand.vmem [shape: f32[32,256], index: 2, kind: output, shape index: {}]  }
   0x1   :  { %v556_v0 = vld [vmem:[%s925_s1 + $0x74] ss:$8 sps:$4 sm:$0xff]   ;;  %v561_v1 = vld [vmem:[%s925_s1 + $0x70] ss:$8 sps:$4 sm:$0xff]   ;;  %v567_v2 = vld [vmem:[%s925_s1 + $0x64] ss:$8 sps:$4 sm:$0xff]  }
   0x2   :  { %215 = vmatprep.subr.bf16.mxu0 %v556_v0  ;;  %280 = vmatprep.subr.bf16.mxu1 %v556_v0  ;;  %v574_v3 = vld [vmem:[%s925_s1 + $0x60] ss:$8 sps:$4 sm:$0xff]   ;;  %v581_v4 = vld [vmem:[%s925_s1 + $0x54] ss:$8 sps:$4 sm:$0xff]   ;;  %v588_v5 = vld [vmem:[%s925_s1 + $0x50] ss:$8 sps:$4 sm:$0xff]  }
   0x3   :  { %216 = vmatpush1.bf16.msra.mxu0 %v561_v1  ;;  %281 = vmatpush1.bf16.msra.mxu1 %v561_v1  ;;  %v595_v6 = vld [vmem:[%s925_s1 + $0x44] ss:$8 sps:$4 sm:$0xff]   ;;  %v602_v7 = vld [vmem:[%s925_s1 + $0x40] ss:$8 sps:$4 sm:$0xff]   ;;  %v609_v8 = vld [vmem:[%s925_s1 + $0x34] ss:$8 sps:$4 sm:$0xff]  }
   0x4   :  { %217 = vmatprep.subr.bf16.mxu0 %v567_v2  ;;  %282 = vmatprep.subr.bf16.mxu1 %v567_v2  ;;  %v616_v9 = vld [vmem:[%s925_s1 + $0x30] ss:$8 sps:$4 sm:$0xff]   ;;  %v623_v10 = vld [vmem:[%s925_s1 + $0x24] ss:$8 sps:$4 sm:$0xff]   ;;  %v630_v11 = vld [vmem:[%s925_s1 + $0x20] ss:$8 sps:$4 sm:$0xff]  }
   0x5   :  { %v637_v12 = vld [vmem:[%s925_s1 + $0x14] ss:$8 sps:$4 sm:$0xff]   ;;  %v643_v13 = vld [vmem:[%s926_s0 + $0x8] sm:$0xff]  ;;  %v656_v16 = vld [vmem:[%s925_s1 + $0x10] ss:$8 sps:$4 sm:$0xff]  }
   0x6   :  { %v648_v14 = vld [vmem:[%s926_s0 + $0x18] sm:$0xff]  ;;  %v663_v17 = vld [vmem:[%s925_s1 + $0x4] ss:$8 sps:$4 sm:$0xff]   ;;  %v670_v18 = vld [vmem:[%s925_s1] ss:$8 sps:$4 sm:$0xff]  }
   0x7   :  { %218 = vmatpush1.bf16.msra.mxu0 %v574_v3  ;;  %283 = vmatpush1.bf16.msra.mxu1 %v574_v3  ;;  %v52_v15 = vpack.c.bf16 %v648_v14, %v643_v13  ;;  %v677_v19 = vld [vmem:[%s925_s1 + $0xf4] ss:$8 sps:$4 sm:$0xff]   ;;  %v684_v20 = vld [vmem:[%s925_s1 + $0xf0] ss:$8 sps:$4 sm:$0xff]   ;;  %v691_v21 = vld [vmem:[%s925_s1 + $0xe4] ss:$8 sps:$4 sm:$0xff]  }
   0x8   :  { %219 = vmatprep.subr.bf16.mxu0 %v581_v4  ;;  %284 = vmatprep.subr.bf16.mxu1 %v581_v4  ;;  %v698_v22 = vld [vmem:[%s925_s1 + $0xe0] ss:$8 sps:$4 sm:$0xff]   ;;  %v705_v23 = vld [vmem:[%s925_s1 + $0xd4] ss:$8 sps:$4 sm:$0xff]   ;;  %v712_v24 = vld [vmem:[%s925_s1 + $0xd0] ss:$8 sps:$4 sm:$0xff]  }
   0x9   :  { %247 = vmatprep.mubr.bf16.mxu0 %v52_v15  ;;  %v719_v25 = vld [vmem:[%s925_s1 + $0xc4] ss:$8 sps:$4 sm:$0xff]   ;;  %v726_v26 = vld [vmem:[%s925_s1 + $0xc0] ss:$8 sps:$4 sm:$0xff]   ;;  %v733_v27 = vld [vmem:[%s925_s1 + $0xb4] ss:$8 sps:$4 sm:$0xff]  }
   0xa   :  { %v740_v28 = vld [vmem:[%s925_s1 + $0xb0] ss:$8 sps:$4 sm:$0xff]   ;;  %v747_v29 = vld [vmem:[%s925_s1 + $0xa4] ss:$8 sps:$4 sm:$0xff]   ;;  %v754_v30 = vld [vmem:[%s925_s1 + $0xa0] ss:$8 sps:$4 sm:$0xff]  }
   0xb   :  { %220 = vmatpush1.bf16.msra.mxu0 %v588_v5  ;;  %285 = vmatpush1.bf16.msra.mxu1 %v588_v5  ;;  %v761_v31 = vld [vmem:[%s925_s1 + $0x94] ss:$8 sps:$4 sm:$0xff]   ;;  %v768_v32 = vld [vmem:[%s925_s1 + $0x90] ss:$8 sps:$4 sm:$0xff]   ;;  %v775_v33 = vld [vmem:[%s925_s1 + $0x84] ss:$8 sps:$4 sm:$0xff]  }
   0xc   :  { %221 = vmatprep.subr.bf16.mxu0 %v595_v6  ;;  %286 = vmatprep.subr.bf16.mxu1 %v595_v6  ;;  %v782_v34 = vld [vmem:[%s925_s1 + $0x80] ss:$8 sps:$4 sm:$0xff]   ;;  %v792_v36 = vld [vmem:[%s926_s0 + $0x10] sm:$0xff]  ;;  %v804_v38 = vld [vmem:[%s926_s0 + $0x38] sm:$0xff] }
   0xd   :  { %v787_v35 = vld [vmem:[%s926_s0] sm:$0xff]  ;;  %v799_v37 = vld [vmem:[%s926_s0 + $0x28] sm:$0xff]  ;;  %v823_v42 = vld [vmem:[%s926_s0 + $0x30] sm:$0xff] }
   0xe   :  { %v51_v39 = vpack.c.bf16 %v792_v36, %v787_v35  ;;  %v54_v40 = vpack.c.bf16 %v804_v38, %v799_v37  ;;  %v818_v41 = vld [vmem:[%s926_s0 + $0x20] sm:$0xff] }
   0xf   :  { %222 = vmatpush1.bf16.msra.mxu0 %v602_v7  ;;  %287 = vmatpush1.bf16.msra.mxu1 %v602_v7  ;;  %v53_v43 = vpack.c.bf16 %v823_v42, %v818_v41 }
  0x10   :  { %223 = vmatprep.subr.bf16.mxu0 %v609_v8  ;;  %288 = vmatprep.subr.bf16.mxu1 %v609_v8 }
  0x13   :  { %224 = vmatpush1.bf16.msra.mxu0 %v616_v9  ;;  %289 = vmatpush1.bf16.msra.mxu1 %v616_v9 }
  0x14   :  { %225 = vmatprep.subr.bf16.mxu0 %v623_v10  ;;  %290 = vmatprep.subr.bf16.mxu1 %v623_v10 }
  0x17   :  { %226 = vmatpush1.bf16.msra.mxu0 %v630_v11  ;;  %291 = vmatpush1.bf16.msra.mxu1 %v630_v11 }
  0x18   :  { %227 = vmatprep.subr.bf16.mxu0 %v637_v12  ;;  %292 = vmatprep.subr.bf16.mxu1 %v637_v12 }
  0x1b   :  { %228 = vmatpush1.bf16.msra.mxu0 %v656_v16  ;;  %293 = vmatpush1.bf16.msra.mxu1 %v656_v16 }
  0x1c   :  { %229 = vmatprep.subr.bf16.mxu0 %v663_v17  ;;  %294 = vmatprep.subr.bf16.mxu1 %v663_v17 }
  0x1f   :  { %230 = vmatpush1.bf16.msra.mxu0 %v670_v18  ;;  %295 = vmatpush1.bf16.msra.mxu1 %v670_v18 }
  0x20   :  { %231 = vmatprep.subr.bf16.mxu0 %v677_v19  ;;  %296 = vmatprep.subr.bf16.mxu1 %v677_v19 }
  0x23   :  { %232 = vmatpush2.bf16.msra.mxu0 %v684_v20  ;;  %297 = vmatpush2.bf16.msra.mxu1 %v684_v20 }
  0x24   :  { %233 = vmatprep.subr.bf16.mxu0 %v691_v21  ;;  %298 = vmatprep.subr.bf16.mxu1 %v691_v21 }
  0x27   :  { %234 = vmatpush2.bf16.msra.mxu0 %v698_v22  ;;  %299 = vmatpush2.bf16.msra.mxu1 %v698_v22 }
  0x28   :  { %235 = vmatprep.subr.bf16.mxu0 %v705_v23  ;;  %300 = vmatprep.subr.bf16.mxu1 %v705_v23 }
  0x2b   :  { %236 = vmatpush2.bf16.msra.mxu0 %v712_v24  ;;  %301 = vmatpush2.bf16.msra.mxu1 %v712_v24 }
  0x2c   :  { %237 = vmatprep.subr.bf16.mxu0 %v719_v25  ;;  %302 = vmatprep.subr.bf16.mxu1 %v719_v25 }
  0x2f   :  { %238 = vmatpush2.bf16.msra.mxu0 %v726_v26  ;;  %303 = vmatpush2.bf16.msra.mxu1 %v726_v26 }
  0x30   :  { %239 = vmatprep.subr.bf16.mxu0 %v733_v27  ;;  %304 = vmatprep.subr.bf16.mxu1 %v733_v27 }
  0x33   :  { %240 = vmatpush2.bf16.msra.mxu0 %v740_v28  ;;  %305 = vmatpush2.bf16.msra.mxu1 %v740_v28 }
  0x34   :  { %241 = vmatprep.subr.bf16.mxu0 %v747_v29  ;;  %306 = vmatprep.subr.bf16.mxu1 %v747_v29 }
  0x37   :  { %242 = vmatpush2.bf16.msra.mxu0 %v754_v30  ;;  %307 = vmatpush2.bf16.msra.mxu1 %v754_v30 }
  0x38   :  { %243 = vmatprep.subr.bf16.mxu0 %v761_v31  ;;  %308 = vmatprep.subr.bf16.mxu1 %v761_v31 }
  0x3b   :  { %244 = vmatpush2.bf16.msra.mxu0 %v768_v32  ;;  %309 = vmatpush2.bf16.msra.mxu1 %v768_v32 }
  0x3c   :  { %245 = vmatprep.subr.bf16.mxu0 %v775_v33  ;;  %310 = vmatprep.subr.bf16.mxu1 %v775_v33 }
  0x3f   :  { %246 = vmatpush2.bf16.msra.mxu0 %v782_v34  ;;  %311 = vmatpush2.bf16.msra.mxu1 %v782_v34 }
  0x40   :  { %345 = vmatprep.subr.bf16.mxu0 %v556_v0  ;;  %458 = vmatprep.subr.bf16.mxu1 %v556_v0 }
  0x42   :  { %248 = vmatmul.mubr.bf16.vlgmr.msra.gmra.mxu0 %v51_v39 }
  0x43   :  { %257 = vmatprep.mubr.bf16.mxu0 %v54_v40  ;;  %346 = vmatpush1.bf16.msra.mxu0 %v561_v1 }
  0x44   :  { %347 = vmatprep.subr.bf16.mxu0 %v567_v2 }
  0x47   :  { %348 = vmatpush1.bf16.msra.mxu0 %v574_v3 }
  0x48   :  { %349 = vmatprep.subr.bf16.mxu0 %v581_v4 }
  0x4a   :  { %258 = vmatmul.mubr.bf16.gmra.mxu0 %v53_v43 }
  0x4b   :  { %350 = vmatpush1.bf16.msra.mxu0 %v588_v5 }
  0x4c   :  { %351 = vmatprep.subr.bf16.mxu0 %v595_v6 }
  0x4f   :  { %352 = vmatpush1.bf16.msra.mxu0 %v602_v7 }
  0x50   :  { %353 = vmatprep.subr.bf16.mxu0 %v609_v8 }
  0x53   :  { %354 = vmatpush1.bf16.msra.mxu0 %v616_v9 }
  0x54   :  { %355 = vmatprep.subr.bf16.mxu0 %v623_v10 }
  0x57   :  { %356 = vmatpush1.bf16.msra.mxu0 %v630_v11 }
  0x58   :  { %357 = vmatprep.subr.bf16.mxu0 %v637_v12 }
  0x5b   :  { %358 = vmatpush1.bf16.msra.mxu0 %v656_v16 }
  0x5c   :  { %359 = vmatprep.subr.bf16.mxu0 %v663_v17 }
  0x5f   :  { %360 = vmatpush1.bf16.msra.mxu0 %v670_v18 }
  0x60   :  { %361 = vmatprep.subr.bf16.mxu0 %v677_v19 }
  0x63   :  { %362 = vmatpush2.bf16.msra.mxu0 %v684_v20 }
  0x64   :  { %363 = vmatprep.subr.bf16.mxu0 %v691_v21 }
  0x67   :  { %364 = vmatpush2.bf16.msra.mxu0 %v698_v22 }
  0x68   :  { %365 = vmatprep.subr.bf16.mxu0 %v705_v23 }
  0x6b   :  { %366 = vmatpush2.bf16.msra.mxu0 %v712_v24 }
  0x6c   :  { %367 = vmatprep.subr.bf16.mxu0 %v719_v25 }
  0x6f   :  { %368 = vmatpush2.bf16.msra.mxu0 %v726_v26 }
  0x70   :  { %369 = vmatprep.subr.bf16.mxu0 %v733_v27 }
  0x73   :  { %370 = vmatpush2.bf16.msra.mxu0 %v740_v28 }
  0x74   :  { %371 = vmatprep.subr.bf16.mxu0 %v747_v29 }
  0x77   :  { %372 = vmatpush2.bf16.msra.mxu0 %v754_v30 }
  0x78   :  { %373 = vmatprep.subr.bf16.mxu0 %v761_v31 }
  0x7b   :  { %374 = vmatpush2.bf16.msra.mxu0 %v768_v32 }
  0x7c   :  { %375 = vmatprep.subr.bf16.mxu0 %v775_v33 }
  0x7f   :  { %376 = vmatpush2.bf16.msra.mxu0 %v782_v34 }
 0x102   :  { %v249_v44 = vpop.f32.mrf.mxu0 }
 0x103   :  { %v268_v56 = vadd.f32 %v249_v44, %v787_v35 }
 0x104   :  { %v251_v45 = vpop.f32.mrf.mxu0 }
 0x105   :  { %v269_v58 = vadd.f32 %v251_v45, %v643_v13 }
 0x106   :  { %v253_v46 = vpop.f32.mrf.mxu0 }
 0x107   :  { %v276_v49 = vpack.c.bf16 %v253_v46, %v249_v44  ;;  %v270_v61 = vadd.f32 %v253_v46, %v792_v36 }
 0x108   :  { %v255_v47 = vpop.f32.mrf.mxu0 }
 0x109   :  { %v277_v48 = vpack.c.bf16 %v255_v47, %v251_v45  ;;  %v271_v0 = vadd.f32 %v255_v47, %v648_v14 }
 0x10a   :  { %v259_v50 = vpop.f32.mrf.mxu0 }
 0x10b   :  { %312 = vmatprep.mubr.bf16.mxu1 %v277_v48 }
 0x10c   :  { %v261_v51 = vpop.f32.mrf.mxu0  ;;  %313 = vmatmul.mubr.bf16.vlgmr.msra.gmra.mxu1 %v276_v49 }
 0x10d   :  { %474 = vmatpush1.bf16.msra.mxu1 %v561_v1 }
 0x10e   :  { %v263_v52 = vpop.f32.mrf.mxu0  ;;  %459 = vmatprep.subr.bf16.mxu1 %v567_v2 }
 0x10f   :  { %v278_v55 = vpack.c.bf16 %v263_v52, %v259_v50 }
 0x110   :  { %v860_v53 = vpop.f32.mrf.mxu0 }
 0x111   :  { %v279_v54 = vpack.c.bf16 %v860_v53, %v261_v51  ;;  %475 = vmatpush1.bf16.msra.mxu1 %v574_v3  ;;  %v272_v3 = vadd.f32 %v259_v50, %v818_v41 }
 0x112   :  { %460 = vmatprep.subr.bf16.mxu1 %v581_v4 }
 0x113   :  { %322 = vmatprep.mubr.bf16.mxu1 %v279_v54 }
 0x114   :  { %323 = vmatmul.mubr.bf16.gmra.mxu1 %v278_v55 }
 0x115   :  { %476 = vmatpush1.bf16.msra.mxu1 %v588_v5 }
 0x116   :  { %461 = vmatprep.subr.bf16.mxu1 %v595_v6 }
 0x119   :  { %477 = vmatpush1.bf16.msra.mxu1 %v602_v7 }
 0x11a   :  { %462 = vmatprep.subr.bf16.mxu1 %v609_v8  ;;  %v273_v8 = vadd.f32 %v261_v51, %v799_v37 }
 0x11d   :  { %478 = vmatpush1.bf16.msra.mxu1 %v616_v9 }
 0x11e   :  { %463 = vmatprep.subr.bf16.mxu1 %v623_v10 }
 0x121   :  { %479 = vmatpush1.bf16.msra.mxu1 %v630_v11  ;;  %v274_v11 = vadd.f32 %v263_v52, %v823_v42 }
 0x122   :  { %464 = vmatprep.subr.bf16.mxu1 %v637_v12 }
 0x125   :  { %480 = vmatpush1.bf16.msra.mxu1 %v656_v16 }
 0x126   :  { %465 = vmatprep.subr.bf16.mxu1 %v663_v17 }
 0x129   :  { %481 = vmatpush1.bf16.msra.mxu1 %v670_v18 }
 0x12a   :  { %466 = vmatprep.subr.bf16.mxu1 %v677_v19 }
 0x12d   :  { %482 = vmatpush2.bf16.msra.mxu1 %v684_v20 }
 0x12e   :  { %467 = vmatprep.subr.bf16.mxu1 %v691_v21 }
 0x131   :  { %483 = vmatpush2.bf16.msra.mxu1 %v698_v22 }
 0x132   :  { %468 = vmatprep.subr.bf16.mxu1 %v705_v23 }
 0x135   :  { %484 = vmatpush2.bf16.msra.mxu1 %v712_v24 }
 0x136   :  { %469 = vmatprep.subr.bf16.mxu1 %v719_v25 }
 0x139   :  { %485 = vmatpush2.bf16.msra.mxu1 %v726_v26 }
 0x13a   :  { %470 = vmatprep.subr.bf16.mxu1 %v733_v27 }
 0x13d   :  { %486 = vmatpush2.bf16.msra.mxu1 %v740_v28 }
 0x13e   :  { %471 = vmatprep.subr.bf16.mxu1 %v747_v29 }
 0x141   :  { %487 = vmatpush2.bf16.msra.mxu1 %v754_v30 }
 0x142   :  { %472 = vmatprep.subr.bf16.mxu1 %v761_v31 }
 0x145   :  { %488 = vmatpush2.bf16.msra.mxu1 %v768_v32 }
 0x146   :  { %473 = vmatprep.subr.bf16.mxu1 %v775_v33  ;;  %v275_v33 = vadd.f32 %v860_v53, %v804_v38 }
 0x149   :  { %489 = vmatpush2.bf16.msra.mxu1 %v782_v34 }
 0x1cc   :  { %v314_v57 = vpop.f32.mrf.mxu1 }
 0x1cd   :  { %v333_v59 = vadd.f32 %v314_v57, %v268_v56 }
 0x1ce   :  { %v316_v60 = vpop.f32.mrf.mxu1 }
 0x1cf   :  { %v334_v62 = vadd.f32 %v316_v60, %v269_v58 }
 0x1d0   :  { %v318_v63 = vpop.f32.mrf.mxu1 }
 0x1d1   :  { %v335_v1 = vadd.f32 %v318_v63, %v270_v61  ;;  %v341_v6 = vpack.c.bf16 %v318_v63, %v314_v57 }
 0x1d2   :  { %v320_v2 = vpop.f32.mrf.mxu1 }
 0x1d3   :  { %v336_v4 = vadd.f32 %v320_v2, %v271_v0  ;;  %v342_v5 = vpack.c.bf16 %v320_v2, %v316_v60 }
 0x1d4   :  { %v324_v7 = vpop.f32.mrf.mxu1 }
 0x1d5   :  { %v337_v9 = vadd.f32 %v324_v7, %v272_v3  ;;  %377 = vmatprep.mubr.bf16.mxu0 %v342_v5 }
 0x1d6   :  { %v326_v10 = vpop.f32.mrf.mxu1  ;;  %378 = vmatmul.mubr.bf16.vlgmr.msra.gmra.mxu0 %v341_v6 }
 0x1d7   :  { %v338_v12 = vadd.f32 %v326_v10, %v273_v8 }
 0x1d8   :  { %v328_v13 = vpop.f32.mrf.mxu1 }
 0x1d9   :  { %v339_v15 = vadd.f32 %v328_v13, %v274_v11  ;;  %v343_v17 = vpack.c.bf16 %v328_v13, %v324_v7 }
 0x1da   :  { %v330_v14 = vpop.f32.mrf.mxu1 }
 0x1db   :  { %v344_v16 = vpack.c.bf16 %v330_v14, %v326_v10  ;;  %v340_v37 = vadd.f32 %v330_v14, %v275_v33 }
 0x1dd   :  { %387 = vmatprep.mubr.bf16.mxu1 %v344_v16 }
 0x1de   :  { %388 = vmatmul.mubr.bf16.vlgmr.msra.gmra.mxu1 %v343_v17 }
 0x296   :  { %v379_v18 = vpop.f32.mrf.mxu0 }
 0x297   :  { %v398_v19 = vadd.f32 %v379_v18, %v333_v59 }
 0x298   :  { %v381_v20 = vpop.f32.mrf.mxu0 }
 0x299   :  { %v406_v21 = vmul.f32 0.25, %v398_v19  ;;  %v399_v22 = vadd.f32 %v381_v20, %v334_v62 }
 0x29a   :  { %v383_v23 = vpop.f32.mrf.mxu0 }
 0x29b   :  { %414 = vst [vmem:[%s927_s2] sm:$0xff] %v406_v21  ;;  %v407_v24 = vmul.f32 0.25, %v399_v22  ;;  %v400_v25 = vadd.f32 %v383_v23, %v335_v1 }
 0x29c   :  { %v385_v26 = vpop.f32.mrf.mxu0 }
 0x29d   :  { %415 = vst [vmem:[%s927_s2 + $0x8] sm:$0xff] %v407_v24  ;;  %v408_v27 = vmul.f32 0.25, %v400_v25  ;;  %v401_v28 = vadd.f32 %v385_v26, %v336_v4 }
 0x29e   :  { %v389_v29 = vpop.f32.mrf.mxu1 }
 0x29f   :  { %416 = vst [vmem:[%s927_s2 + $0x10] sm:$0xff] %v408_v27  ;;  %v409_v30 = vmul.f32 0.25, %v401_v28  ;;  %v402_v31 = vadd.f32 %v389_v29, %v337_v9 }
 0x2a0   :  { %v391_v32 = vpop.f32.mrf.mxu1 }
 0x2a1   :  { %417 = vst [vmem:[%s927_s2 + $0x18] sm:$0xff] %v409_v30  ;;  %v410_v34 = vmul.f32 0.25, %v402_v31  ;;  %v403_v35 = vadd.f32 %v391_v32, %v338_v12 }
 0x2a2   :  { %v393_v36 = vpop.f32.mrf.mxu1 }
 0x2a3   :  { %418 = vst [vmem:[%s927_s2 + $0x20] sm:$0xff] %v410_v34  ;;  %v411_v39 = vmul.f32 0.25, %v403_v35  ;;  %v404_v40 = vadd.f32 %v393_v36, %v339_v15 }
 0x2a4   :  { %v395_v41 = vpop.f32.mrf.mxu1 }
 0x2a5   :  { %419 = vst [vmem:[%s927_s2 + $0x28] sm:$0xff] %v411_v39  ;;  %v412_v38 = vmul.f32 0.25, %v404_v40  ;;  %v405_v42 = vadd.f32 %v395_v41, %v340_v37 }
 0x2a7   :  { %420 = vst [vmem:[%s927_s2 + $0x30] sm:$0xff] %v412_v38  ;;  %v413_v43 = vmul.f32 0.25, %v405_v42 }
 0x2a9   :  { %421 = vst [vmem:[%s927_s2 + $0x38] sm:$0xff] %v413_v43 }

</bundles_post_ra>
